<compile_context>
chip_gen: v5e
topology: v5e:2x2
jax: 0.10.0
libtpu: 0.0.40
codegen_flags: <defaults>
</compile_context>

<pallas_src>
from functools import partial

import jax
import jax.numpy as jnp
from jax.experimental import pallas as pl
from jax.experimental.pallas import tpu as pltpu


def _round_up(v, m):
    return (v + m - 1) // m * m


def _kernel_regression_kernel(x_ref, m_ref, b_ref, out_ref):
    # x_ref : (TM, D)   f32   flattened input batch tile (cast to bf16 in-kernel)
    # m_ref : (D,  Cp)  bf16  fused matrix  M = X_train^T @ W^T, class-padded with 0
    # b_ref : (1,  Cp)  f32   classifier bias, pad classes = -1e30
    # out_ref:(TM, Cp)  f32   softmax probabilities (pad classes ~ 0)

    # Single fused matmul: logits = x @ (X_train^T W^T) + b, f32 accumulation on MXU.
    x_bf16 = x_ref[...].astype(jnp.bfloat16)          # free VPU cast under the MXU
    logits = jnp.dot(x_bf16, m_ref[...],
                     preferred_element_type=jnp.float32) + b_ref[...]

    # Numerically stable softmax over the (padded) class dimension; pad classes
    # carry a -1e30 bias -> exp == 0, so this equals softmax over real classes only.
    mx = jnp.max(logits, axis=-1, keepdims=True)
    e = jnp.exp(logits - mx)
    denom = jnp.sum(e, axis=-1, keepdims=True)
    out_ref[...] = e * pl.reciprocal(denom, approx=True)   # EUP divide


def prepare_params(train_x_flat, cls_w, cls_b):
    """Hoisted, call-once prep of the constant operands.

    Folds the classifier into the training matrix (exact algebraic fusion):
      M = X_train^T @ W^T   computed in f32, stored bf16, classes padded to 128.
    Returns (m_pad, b_pad):
      m_pad: (D, Cp) bf16
      b_pad: (1, Cp) f32  (pad classes set to -1e30, masked out of the softmax)
    """
    N, D = train_x_flat.shape
    C = cls_w.shape[0]
    c_pad = _round_up(C, 128)

    m = jnp.dot(train_x_flat.T.astype(jnp.float32), cls_w.T.astype(jnp.float32),
                preferred_element_type=jnp.float32)                    # (D, C) f32
    m_pad = jnp.zeros((D, c_pad), jnp.bfloat16).at[:, :C].set(m.astype(jnp.bfloat16))

    b_pad = jnp.full((1, c_pad), -1e30, dtype=jnp.float32)
    b_pad = b_pad.at[0, :C].set(cls_b.astype(jnp.float32))
    return m_pad, b_pad


@partial(jax.jit, static_argnames=("cls_num", "base_tm"))
def kernel_regression_forward(x_nchw, m_pad, b_pad, *, cls_num, base_tm=128):
    """x_nchw: (B, C, H, W) f32; (m_pad, b_pad) from prepare_params()."""
    B = x_nchw.shape[0]
    D, c_pad = m_pad.shape

    # Flatten only; no wrapper-side cast (bf16 cast is done in-kernel).
    x_flat = x_nchw.reshape(B, -1)
    assert x_flat.shape[1] == D, "input feature size must match X_train feature size"

    # Adaptive batch tile: don't pad tiny batches up to 128 rows (16 = bf16 sublane
    # pack).  For large batches bump to 256 rows to match the 256x256 MXU on
    # v6e/v7x while keeping the parallel grid length >= 2 (v7x has 2 TensorCores).
    tm = min(base_tm, _round_up(max(B, 1), 16))
    if B >= 512:
        tm = 256
    b_rows = _round_up(max(B, 1), tm)
    if b_rows != B:
        x_flat = jnp.pad(x_flat, ((0, b_rows - B), (0, 0)))  # zero rows, sliced off below

    grid = (b_rows // tm,)

    out = pl.pallas_call(
        _kernel_regression_kernel,
        out_shape=jax.ShapeDtypeStruct((b_rows, c_pad), jnp.float32),
        grid=grid,
        in_specs=[
            pl.BlockSpec((tm, D), lambda i: (i, 0)),      # x: tiled over batch (pipelined)
            pl.BlockSpec((D, c_pad), lambda i: (0, 0)),   # fused M: VMEM-resident (tiny)
            pl.BlockSpec((1, c_pad), lambda i: (0, 0)),   # bias:    VMEM-resident
        ],
        out_specs=pl.BlockSpec((tm, c_pad), lambda i: (i, 0)),
        compiler_params=pltpu.CompilerParams(
            dimension_semantics=("parallel",),            # megacore / v7x 2-TC sharding
            vmem_limit_bytes=32 << 20,
        ),
    )(x_flat, m_pad, b_pad)

    # Drop batch padding rows and the padded (masked-out) classes.
    return out[:B, :cls_num]


def reference_forward_f32(x_nchw, train_x_flat, cls_w, cls_b):
    """Pure-f32 reference matching the PyTorch module's forward math."""
    x_flat = x_nchw.reshape(x_nchw.shape[0], -1)
    g = jnp.dot(x_flat, train_x_flat.T)
    logits = jnp.dot(g, cls_w.T) + cls_b
    return jax.nn.softmax(logits, axis=-1)


def reference_forward_bf16(x_nchw, train_x_flat, cls_w, cls_b):
    """Reference mirroring the kernel's operand precision (bf16 MXU, f32 accumulate,
    classifier folded into X_train in f32 then cast to bf16)."""
    m = jnp.dot(train_x_flat.T, cls_w.T,
                preferred_element_type=jnp.float32).astype(jnp.bfloat16)
    x_flat = x_nchw.reshape(x_nchw.shape[0], -1).astype(jnp.bfloat16)
    logits = jnp.dot(x_flat, m, preferred_element_type=jnp.float32) + cls_b
    return jax.nn.softmax(logits, axis=-1)


if __name__ == "__main__":
    key = jax.random.PRNGKey(0)
    k_train, k_x, k_w, k_b, k_pre = jax.random.split(key, 5)

    # Small, module-consistent shapes:
    #   batch=2, channels=3, spatial=8 -> D = 3*8*8 = 192
    #   N_train = 128 (stand-in for the 500 SVHN images), cls_num = 10 (padded to 128)
    B, Cch, H, W = 2, 3, 8, 8
    N_train, cls_num, hidden_layer = 128, 10, 32
    D = Cch * H * W

    # Synthetic "train_32x32.mat" stand-in: uniform [0,1], normalized like the module.
    train_imgs = jax.random.uniform(k_train, (N_train, Cch, H, W), dtype=jnp.float32)
    train_imgs = (train_imgs - 0.5) / 0.5
    train_x_flat = train_imgs.reshape(N_train, -1)               # (N, D)

    # Deterministic parameter init (classifier: Linear(N_train, cls_num)).
    cls_w = jax.random.normal(k_w, (cls_num, N_train), dtype=jnp.float32) * 0.05
    cls_b = jax.random.normal(k_b, (cls_num,), dtype=jnp.float32) * 0.05

    # TODO(synk): `preprocess` Linear(D, hidden_layer) (and `beta` / the rbf branch)
    # are evaluated or defined in the PyTorch module but their outputs never reach
    # the forward result, so they are omitted from the kernel (dead compute).
    _pre_w = jax.random.normal(k_pre, (hidden_layer, D), dtype=jnp.float32) * 0.05

    # Example input batch (NCHW, like the PyTorch module expects).
    x = jax.random.normal(k_x, (B, Cch, H, W), dtype=jnp.float32)

    # Constant-weight prep (classifier folded into X_train): done ONCE.
    m_pad, b_pad = prepare_params(train_x_flat, cls_w, cls_b)
    m_pad, b_pad = jax.block_until_ready((m_pad, b_pad))

    out = kernel_regression_forward(x, m_pad, b_pad, cls_num=cls_num)
    out = jax.block_until_ready(out)
    assert out.shape == (B, cls_num)

    # Tight check vs a reference with identical operand precision (bf16 MXU, f32 acc).
    ref_bf16 = reference_forward_bf16(x, train_x_flat, cls_w, cls_b)
    assert jnp.allclose(out, ref_bf16, atol=2e-3, rtol=2e-3), "mismatch vs bf16 reference"

    # Loose sanity check vs the pure-f32 module semantics (bf16 operand rounding only).
    ref_f32 = reference_forward_f32(x, train_x_flat, cls_w, cls_b)
    assert jnp.allclose(out, ref_f32, atol=5e-2), "mismatch vs f32 module reference"

    # Softmax rows sum to 1 (within approx-reciprocal tolerance).
    assert jnp.allclose(jnp.sum(out, axis=-1), 1.0, atol=5e-3), "softmax rows must sum to 1"

    print("KERNEL_OK")
</pallas_src>

<mosaic_0001>
module attributes {stable_mosaic.version = 11 : i64} {
  func.func @_kernel_regression_kernel(%arg0: i32, %arg1: memref<16x192xf32, #tpu.memory_space<vmem>>, %arg2: memref<192x128xbf16, #tpu.memory_space<vmem>>, %arg3: memref<1x128xf32, #tpu.memory_space<vmem>>, %arg4: memref<16x128xf32, #tpu.memory_space<vmem>>) attributes {dimension_semantics = [#tpu.dimension_semantics<parallel>], iteration_bounds = array<i64: 1>, scalar_prefetch = 0 : i64, scratch_operands = 0 : i64, tpu.core_type = #tpu.core_type<tc>, window_params = [{transform_indices = @transform_0, window_bounds = array<i64: 16, 192>}, {pipeline_mode = #tpu.pipeline_mode<synchronous>, transform_indices = @transform_1, window_bounds = array<i64: 192, 128>}, {pipeline_mode = #tpu.pipeline_mode<synchronous>, transform_indices = @transform_2, window_bounds = array<i64: 1, 128>}, {transform_indices = @transform_3, window_bounds = array<i64: 16, 128>}]} {
    %c0 = arith.constant 0 : index
    %c0_0 = arith.constant 0 : index
    %0 = vector.load %arg1[%c0, %c0_0] : memref<16x192xf32, #tpu.memory_space<vmem>>, vector<16x192xf32>
    %1 = arith.truncf %0 : vector<16x192xf32> to vector<16x192xbf16>
    %c0_1 = arith.constant 0 : index
    %c0_2 = arith.constant 0 : index
    %2 = vector.load %arg2[%c0_1, %c0_2] : memref<192x128xbf16, #tpu.memory_space<vmem>>, vector<192x128xbf16>
    %cst = arith.constant dense<0.000000e+00> : vector<16x128xf32>
    %3 = tpu.matmul %1, %2, %cst {dimension_numbers = #tpu.dot_dimension_numbers<[1], [0], [0], [1], [0, 0, 1, 1], [], []>} : vector<16x192xbf16>, vector<192x128xbf16>, vector<16x128xf32> -> vector<16x128xf32>
    %c0_3 = arith.constant 0 : index
    %c0_4 = arith.constant 0 : index
    %4 = vector.load %arg3[%c0_3, %c0_4] : memref<1x128xf32, #tpu.memory_space<vmem>>, vector<1x128xf32>
    %5 = vector.broadcast %4 : vector<1x128xf32> to vector<16x128xf32>
    %6 = arith.addf %3, %5 : vector<16x128xf32>
    %cst_5 = arith.constant dense<0xFF800000> : vector<16xf32>
    %7 = vector.multi_reduction <maximumf>, %6, %cst_5 [1] : vector<16x128xf32> to vector<16xf32>
    %8 = vector.shape_cast %7 : vector<16xf32> to vector<16x1xf32>
    %9 = vector.broadcast %8 : vector<16x1xf32> to vector<16x128xf32>
    %10 = arith.subf %6, %9 : vector<16x128xf32>
    %11 = math.exp %10 : vector<16x128xf32>
    %cst_6 = arith.constant dense<0.000000e+00> : vector<16xf32>
    %12 = vector.multi_reduction <add>, %11, %cst_6 [1] : vector<16x128xf32> to vector<16xf32>
    %13 = vector.shape_cast %12 : vector<16xf32> to vector<16x1xf32>
    %14 = tpu.reciprocal %13 {approx = true} : vector<16x1xf32> -> vector<16x1xf32>
    %15 = vector.broadcast %14 : vector<16x1xf32> to vector<16x128xf32>
    %16 = arith.mulf %11, %15 : vector<16x128xf32>
    %c0_7 = arith.constant 0 : index
    %c0_8 = arith.constant 0 : index
    %17 = vector.load %arg4[%c0_7, %c0_8] : memref<16x128xf32, #tpu.memory_space<vmem>>, vector<16x128xf32>
    tpu.vector_store %arg4[%c0_7, %c0_8], %16 {strides = array<i32>} : memref<16x128xf32, #tpu.memory_space<vmem>>, vector<16x128xf32>,
    return
  }
  func.func @transform_0(%arg0: i32) -> (i32, i32) {
    %c0_i32 = arith.constant 0 : i32
    %c0_i32_0 = arith.constant 0 : i32
    return %arg0, %c0_i32 : i32, i32
  }
  func.func @transform_1(%arg0: i32) -> (i32, i32) {
    %c0_i32 = arith.constant 0 : i32
    %c0_i32_0 = arith.constant 0 : i32
    %c0_i32_1 = arith.constant 0 : i32
    return %c0_i32, %c0_i32_0 : i32, i32
  }
  func.func @transform_2(%arg0: i32) -> (i32, i32) {
    %c0_i32 = arith.constant 0 : i32
    %c0_i32_0 = arith.constant 0 : i32
    %c0_i32_1 = arith.constant 0 : i32
    return %c0_i32, %c0_i32_0 : i32, i32
  }
  func.func @transform_3(%arg0: i32) -> (i32, i32) {
    %c0_i32 = arith.constant 0 : i32
    %c0_i32_0 = arith.constant 0 : i32
    return %arg0, %c0_i32 : i32, i32
  }
}

</mosaic_0001>

<bundles_post_ra>
// kernel: kernel_regression_forward.1
= control target key start
LH: loop header
LB: loop body
LE: loop exit
PB: predicated region body
PF: predicated region fallthrough
CT: control target
= control target key end

     0   :  { %8 = vsyncpa [#allocation3], 0  ;;  %s293_s15 = smov [#allocation2]   ;;  %s294_s17 = smov 64   ;;  %s340_s0 = inlined_call_operand.vmem [shape: f32[16,192], index: 0, kind: input, shape index: {}]   ;;  %s341_s1 = inlined_call_operand.hbm [shape: bf16[192,128], index: 1, kind: input, shape index: {}]   ;;  %s342_s2 = inlined_call_operand.vmem [shape: f32[1,128], index: 2, kind: input, shape index: {}]   ;;  %s343_s3 = inlined_call_operand.vmem [shape: f32[16,128], index: 3, kind: output, shape index: {}]  }
   0x1   :  { %s15_s14 = sshll.u32 %s341_s1, 4  ;;  %s17_s16 = sshll.u32 %s293_s15, 4  ;;  %s16_s14 = int_to_ptr.hbm [resolvable:$true] %s15_s14  ;;  %s18_s16 = int_to_ptr.vmem [resolvable:$true] %s17_s16 }
   0x2   :  { %s295_s18 = smov 4  }
   0x3   :  { %23 = dma.hbm_to_vmem [thread:$0]  %s16_s14, 1536, %s18_s16, [#allocation3], %s294_s17, %s294_s17, %s295_s18  }
   0x4   :  { %291 = dma.done.wait [#allocation3], 1536  }
   0x5   :  { %292 = vsyncadd [#allocation3], 4294965760  ;;  %v250_v0 = vld [vmem:[#allocation2 + $0x38] sm:$0xff]  ;;  %v249_v2 = vld [vmem:[#allocation2 + $0x30] sm:$0xff]  ;;  %vm137_vm0 = vcmask 523264  }
   0x6   :  { %v254_v1 = vld [vmem:[#allocation2 + $0x58] sm:$0xff]  ;;  %141 = vmatpush.bf16.msra.mxu0 %v250_v0  ;;  %v253_v3 = vld [vmem:[#allocation2 + $0x50] sm:$0xff]  ;;  %v248_v4 = vld [vmem:[#allocation2 + $0x28] sm:$0xff] }
   0x7   :  { %159 = vmatpush.bf16.msra.mxu1 %v254_v1  ;;  %v252_v5 = vld [vmem:[#allocation2 + $0x48] sm:$0xff]  ;;  %v247_v6 = vld [vmem:[#allocation2 + $0x20] sm:$0xff]  ;;  %v34_v9 = vld [vmem:[%s340_s0 + $0x18] sm:$0xff] }
   0x8   :  { %v251_v7 = vld [vmem:[#allocation2 + $0x40] sm:$0xff]  ;;  %v32_v8 = vld [vmem:[%s340_s0 + $0x8] sm:$0xff]  ;;  %v246_v10 = vld [vmem:[#allocation2 + $0x18] sm:$0xff] }
   0x9   :  { %v36_v11 = vpack.c.bf16 %v34_v9, %v32_v8  ;;  %v245_v12 = vld [vmem:[#allocation2 + $0x10] sm:$0xff]  ;;  %v244_v13 = vld [vmem:[#allocation2 + $0x8] sm:$0xff]  ;;  %v243_v14 = vld [vmem:[#allocation2] sm:$0xff] }
   0xa   :  { %142 = vmatpush.bf16.msra.mxu0 %v249_v2  ;;  %v31_v15 = vld [vmem:[%s340_s0] sm:$0xff]  ;;  %v33_v16 = vld [vmem:[%s340_s0 + $0x10] sm:$0xff] }
   0xb   :  { %160 = vmatpush.bf16.msra.mxu1 %v253_v3  ;;  %v35_v17 = vpack.c.bf16 %v33_v16, %v31_v15  ;;  %v258_v18 = vld [vmem:[%s342_s2] ss:$0 sm:$0xff] }
   0xe   :  { %143 = vmatpush.bf16.msra.mxu0 %v248_v4 }
   0xf   :  { %161 = vmatpush.bf16.msra.mxu1 %v252_v5 }
  0x12   :  { %144 = vmatpush.bf16.msra.mxu0 %v247_v6 }
  0x13   :  { %162 = vmatpush.bf16.msra.mxu1 %v251_v7 }
  0x16   :  { %145 = vmatpush.bf16.msra.mxu0 %v246_v10  ;;  %242 = vmatmul.msk.bf16.vlgmr.msra.gmra.mxu1 %vm137_vm0, %v36_v11 }
  0x1a   :  { %146 = vmatpush.bf16.msra.mxu0 %v245_v12 }
  0x1e   :  { %147 = vmatpush.bf16.msra.mxu0 %v244_v13 }
  0x22   :  { %148 = vmatpush.bf16.msra.mxu0 %v243_v14 }
  0x25   :  { %149 = vmatmul.bf16.vlgmr.msra.gmra.mxu0 %v35_v17 }
  0x93   :  { %v164_v19 = vpop.f32.mrf.mxu1 }
  0x9b   :  { %v166_v25 = vpop.f32.mrf.mxu1 }
  0xa2   :  { %v150_v20 = vpop.f32.mrf.mxu0 }
  0xa3   :  { %v151_v21 = vadd.f32 %v258_v18, %v150_v20 }
  0xa5   :  { %v165_v22 = vadd.f32 %v164_v19, %v151_v21 }
  0xa7   :  { %169 = vmax.xlane.f32.xlu0 %v165_v22 }
  0xaa   :  { %v152_v23 = vpop.f32.mrf.mxu0 }
  0xab   :  { %v153_v24 = vadd.f32 %v258_v18, %v152_v23 }
  0xad   :  { %v167_v26 = vadd.f32 %v166_v25, %v153_v24 }
  0xaf   :  { %171 = vmax.xlane.f32.xlu0 %v167_v26 }
 0x11a   :  { %v170_v27 = vpop.xlane.xlu0 %169 }
 0x11b   :  { %v173_v28 = vsub.f32 %v165_v22, %v170_v27 }
 0x11d   :  { %v175_v29 = vmul.f32 1.442695, %v173_v28 }
 0x11f   :  { %259 = vpow2.f32 %v175_v29 }
 0x122   :  { %v172_v30 = vpop.xlane.xlu0 %171 }
 0x123   :  { %v174_v31 = vsub.f32 %v167_v26, %v172_v30 }
 0x125   :  { %v260_v32 = vpop.eup %259  ;;  %v177_v33 = vmul.f32 1.442695, %v174_v31 }
 0x126   :  { %179 = vadd.xlane.f32.xlu1 %v260_v32 }
 0x127   :  { %261 = vpow2.f32 %v177_v33 }
 0x12d   :  { %v262_v34 = vpop.eup %261 }
 0x12e   :  { %181 = vadd.xlane.f32.xlu1 %v262_v34 }
 0x199   :  { %v180_v35 = vpop.xlane.xlu1 %179 }
 0x19a   :  { %263 = vrcp.f32 %v180_v35 }
 0x1a0   :  { %v264_v36 = vpop.eup %263 }
 0x1a1   :  { %v185_v37 = vmul.f32 %v264_v36, %v260_v32  ;;  %v182_v38 = vpop.xlane.xlu1 %181 }
 0x1a2   :  { %265 = vrcp.f32 %v182_v38 }
 0x1a3   :  { %187 = vst [vmem:[%s343_s3] sm:$0xff] %v185_v37 }
 0x1a8   :  { %v266_v39 = vpop.eup %265 }
 0x1a9   :  { %v186_v40 = vmul.f32 %v266_v39, %v262_v34 }
 0x1ab   :  { %188 = vst [vmem:[%s343_s3 + $0x8] sm:$0xff] %v186_v40 }
 0x1ac   :  { %193 = vsyncpa [#allocation3], 1 }

</bundles_post_ra>
